<compile_context>
chip_gen: v7x
topology: tpu7x:2x2x1
jax: 0.10.0
libtpu: 0.0.40
codegen_flags: <defaults>
</compile_context>

<pallas_src>
import functools

import jax
import jax.numpy as jnp
import numpy as np
from jax.experimental import pallas as pl
from jax.experimental.pallas import tpu as pltpu


# Resident-table fast path is taken when 2x the table (the input block is
# double-buffered) fits this budget.  Kept conservative so it is valid on every
# generation (v7x: 64 MiB physical VMEM vs 128 MiB on v5e/v6e).
_RESIDENT_TABLE_BYTES = 12 * 1024 * 1024
_VMEM_LIMIT_BYTES = 32 * 1024 * 1024


def _round_up(x, m):
    return (x + m - 1) // m * m


def _resident_gather_kernel(idx_ref, table_ref, out_ref):
    """Whole (unpadded) table resident in VMEM; gather rows with dynamic loads."""
    tile_n = out_ref.shape[0]
    base = pl.program_id(0) * tile_n

    @pl.loop(0, tile_n)
    def _(r):
        row = idx_ref[base + r]                       # scalar read from SMEM
        out_ref[pl.ds(r, 1), :] = table_ref[pl.ds(row, 1), :]


def _streaming_gather_kernel(idx_ref, table_hbm, out_ref, sem):
    """Table stays in HBM; per-row DMAs land directly in the output VMEM tile."""
    tile_n = out_ref.shape[0]
    base = pl.program_id(0) * tile_n

    # Start every row copy for this tile (deep DMA window, one semaphore).
    @pl.loop(0, tile_n)
    def _(r):
        row = idx_ref[base + r]
        pltpu.make_async_copy(
            table_hbm.at[pl.ds(row, 1), :],
            out_ref.at[pl.ds(r, 1), :],
            sem,
        ).start()

    # Drain: all copies have identical byte size, so wait once per started copy
    # using an equivalent-size descriptor (standard Pallas wait idiom).
    @pl.loop(0, tile_n)
    def _(r):
        pltpu.make_async_copy(
            table_hbm.at[pl.ds(0, 1), :],
            out_ref.at[pl.ds(0, 1), :],
            sem,
        ).wait()


@functools.partial(jax.jit, static_argnames=("force_streaming",))
def alias_entity_lookup(table, alias_indices, *, force_streaming=False):
    """Pallas equivalent of AliasEntityTable.forward: table[alias_indices].

    table:          (num_aliases_with_pad, K) int32
    alias_indices:  any integer shape, values in [0, num_aliases_with_pad)
    returns:        alias_indices.shape + (K,), table.dtype
    """
    num_aliases_with_pad, K = table.shape
    itemsize = table.dtype.itemsize

    flat_idx = alias_indices.reshape(-1).astype(jnp.int32)
    N = int(flat_idx.shape[0])

    # Chunk many rows per grid step; sublane-pad the tile to a multiple of 8 so
    # output tiles are full (no masked 1-sublane partial stores).
    num_tiles = pl.cdiv(N, 512)
    tile_n = _round_up(pl.cdiv(N, num_tiles), 8)
    n_pad = num_tiles * tile_n
    if n_pad != N:
        flat_idx = jnp.pad(flat_idx, (0, n_pad - N))  # pad idx = 0 (valid row)

    table_bytes = num_aliases_with_pad * K * itemsize
    use_resident = (not force_streaming) and (2 * table_bytes <= _RESIDENT_TABLE_BYTES)

    cost = pl.CostEstimate(
        flops=0,
        transcendentals=0,
        bytes_accessed=2 * n_pad * K * itemsize + table_bytes,
    )
    compiler_params = pltpu.CompilerParams(
        # Output tiles are independent -> parallel lets v7x shard the tile loop
        # across both TensorCores (no-op on single-core v5e/v6e).
        dimension_semantics=("parallel",),
        vmem_limit_bytes=_VMEM_LIMIT_BYTES,
    )

    if use_resident:
        out = pl.pallas_call(
            _resident_gather_kernel,
            out_shape=jax.ShapeDtypeStruct((n_pad, K), table.dtype),
            grid_spec=pltpu.PrefetchScalarGridSpec(
                num_scalar_prefetch=1,
                grid=(num_tiles,),
                in_specs=[
                    # Whole unpadded table as one block; constant index_map keeps
                    # it resident in VMEM across grid steps.
                    pl.BlockSpec((num_aliases_with_pad, K), lambda i, idx: (0, 0)),
                ],
                out_specs=pl.BlockSpec((tile_n, K), lambda i, idx: (i, 0)),
            ),
            compiler_params=compiler_params,
            cost_estimate=cost,
        )(flat_idx, table)
    else:
        out = pl.pallas_call(
            _streaming_gather_kernel,
            out_shape=jax.ShapeDtypeStruct((n_pad, K), table.dtype),
            grid_spec=pltpu.PrefetchScalarGridSpec(
                num_scalar_prefetch=1,
                grid=(num_tiles,),
                in_specs=[
                    # Raw HBM ref; rows are DMA'd on demand inside the kernel.
                    pl.BlockSpec(memory_space=pl.ANY),
                ],
                out_specs=pl.BlockSpec((tile_n, K), lambda i, idx: (i, 0)),
                scratch_shapes=[pltpu.SemaphoreType.DMA],
            ),
            compiler_params=compiler_params,
            cost_estimate=cost,
        )(flat_idx, table)

    return out[:N].reshape(alias_indices.shape + (K,))


def build_alias_table(num_aliases, max_candidates, train_in_candidates,
                      num_entities, key):
    """Deterministic synthetic stand-in for AliasEntityTable.build_alias_table.

    Every row defaults to -1; slot 0 gets the NIL candidate (eid 0) when not
    train_in_candidates; the alias' candidate eids fill the rest; the last
    (pad) row stays all -1.
    """
    # TODO(synk): prep()/np.memmap file caching is pure host I/O with no
    # compute — not translated; the table is built in memory instead.
    K = max_candidates + (not train_in_candidates)
    num_aliases_with_pad = num_aliases + 1
    table = np.full((num_aliases_with_pad, K), -1, dtype=np.int32)

    k_ncand, k_eid = jax.random.split(key)
    num_cands = np.asarray(
        jax.random.randint(k_ncand, (num_aliases,), 1, max_candidates + 1))
    eids = np.asarray(
        jax.random.randint(k_eid, (num_aliases, max_candidates), 1,
                           num_entities))

    offset = int(not train_in_candidates)
    for a in range(num_aliases):
        if not train_in_candidates:
            table[a, 0] = 0  # NIL / not-in-candidate slot
        n = int(num_cands[a])
        table[a, offset:offset + n] = eids[a, :n]
    # last row (pad alias) remains all -1, matching the module's assertion.
    return jnp.asarray(table)


if __name__ == "__main__":
    key = jax.random.PRNGKey(0)
    k_table, k_idx = jax.random.split(key)

    # Small synthetic config consistent with the module's __init__:
    num_aliases = 16                 # len(get_all_aliases())
    num_aliases_with_pad = num_aliases + 1
    max_candidates = 4
    train_in_candidates = False
    K = max_candidates + (not train_in_candidates)   # 5
    num_entities = 50
    batch, M = 2, 8                  # M = max_aliases per example

    table = build_alias_table(num_aliases, max_candidates,
                              train_in_candidates, num_entities, k_table)
    assert np.all(np.asarray(table[-1]) == -1)

    alias_indices = jax.random.randint(k_idx, (batch, M), 0,
                                       num_aliases_with_pad, dtype=jnp.int32)

    # Reference: plain JAX gather (== torch table[alias_indices]).
    ref = table[alias_indices]

    # Fast path: table resident in VMEM, in-kernel gather.
    out_fast = jax.block_until_ready(alias_entity_lookup(table, alias_indices))
    # Large-table path: table stays in HBM, per-row DMA gather (forced here so
    # both code paths are exercised on the small demo table).
    out_stream = jax.block_until_ready(
        alias_entity_lookup(table, alias_indices, force_streaming=True))

    for out in (out_fast, out_stream):
        assert out.shape == (batch, M, K), out.shape
        assert out.dtype == table.dtype, out.dtype
        assert jnp.array_equal(out, ref), "Pallas gather mismatch vs reference"

    print("KERNEL_OK")
</pallas_src>

<mosaic_0001>
module attributes {stable_mosaic.version = 11 : i64} {
  func.func @_resident_gather_kernel(%arg0: i32, %arg1: memref<16xi32, #tpu.memory_space<smem>>, %arg2: memref<17x5xi32, #tpu.memory_space<vmem>>, %arg3: memref<16x5xi32, #tpu.memory_space<vmem>>) attributes {dimension_semantics = [#tpu.dimension_semantics<parallel>], iteration_bounds = array<i64: 1>, scalar_prefetch = 1 : i64, scratch_operands = 0 : i64, tpu.core_type = #tpu.core_type<tc>, window_params = [{pipeline_mode = #tpu.pipeline_mode<synchronous>, transform_indices = @transform_0, window_bounds = array<i64: 17, 5>}, {transform_indices = @transform_1, window_bounds = array<i64: 16, 5>}]} {
    %c16_i32 = arith.constant 16 : i32
    %0 = arith.muli %arg0, %c16_i32 : i32
    %c0_i32 = arith.constant 0 : i32
    %c16_i32_0 = arith.constant 16 : i32
    %1 = arith.addi %c0_i32, %c16_i32_0 : i32
    %c1_i32 = arith.constant 1 : i32
    scf.for %arg4 = %c0_i32 to %1 step %c1_i32  : i32 {
      %c1_i32_2 = arith.constant 1 : i32
      %2 = arith.muli %arg4, %c1_i32_2 : i32
      %c0_i32_3 = arith.constant 0 : i32
      %3 = arith.addi %c0_i32_3, %2 : i32
      %4 = arith.addi %0, %3 : i32
      %5 = arith.index_cast %4 : i32 to index
      %6 = memref.load %arg1[%5] : memref<16xi32, #tpu.memory_space<smem>>
      %7 = arith.index_cast %6 : i32 to index
      %c0 = arith.constant 0 : index
      %8 = vector.load %arg2[%7, %c0] : memref<17x5xi32, #tpu.memory_space<vmem>>, vector<1x5xi32>
      %9 = arith.index_cast %3 : i32 to index
      %c0_4 = arith.constant 0 : index
      %10 = vector.load %arg3[%9, %c0_4] : memref<16x5xi32, #tpu.memory_space<vmem>>, vector<1x5xi32>
      tpu.vector_store %arg3[%9, %c0_4], %8 {strides = array<i32>} : memref<16x5xi32, #tpu.memory_space<vmem>>, vector<1x5xi32>,
    }
    %c16_i32_1 = arith.constant 16 : i32
    return
  }
  func.func @transform_0(%arg0: i32, %arg1: memref<16xi32, #tpu.memory_space<smem>>) -> (i32, i32) {
    %c0_i32 = arith.constant 0 : i32
    %c0_i32_0 = arith.constant 0 : i32
    %c0_i32_1 = arith.constant 0 : i32
    return %c0_i32, %c0_i32_0 : i32, i32
  }
  func.func @transform_1(%arg0: i32, %arg1: memref<16xi32, #tpu.memory_space<smem>>) -> (i32, i32) {
    %c0_i32 = arith.constant 0 : i32
    %c0_i32_0 = arith.constant 0 : i32
    return %arg0, %c0_i32 : i32, i32
  }
}

</mosaic_0001>

<bundles_post_ra>
// kernel: alias_entity_lookup.1
= control target key start
LH: loop header
LB: loop body
LE: loop exit
PB: predicated region body
PF: predicated region fallthrough
CT: control target
= control target key end

     0   :  { %s96_s0 = inlined_call_operand.vmem [shape: s32[16], index: 0, kind: input, shape index: {}]   ;;  %s97_s1 = inlined_call_operand.vmem [shape: s32[17,5], index: 1, kind: input, shape index: {}]   ;;  %s98_s2 = inlined_call_operand.vmem [shape: s32[16,5], index: 2, kind: output, shape index: {}]  }
   0x1   :  { %s7_s11 = sshll.u32 %s96_s0, 4  ;;  %s8_s11 = int_to_ptr.vmem [resolvable:$true] %s7_s11 }
   0x2   :  { %s49_s12 = scalar_lea.vmem %s8_s11, 16  ;;  %p54_p1 = scmp.lt.s32.totalorder %s8_s11, %s8_s11 }
   0x3   :  { %p50_p0 = scmp.ne.s32.totalorder %s8_s11, %s49_s12  ;;  %p55_p2 = scmp.lt.s32.totalorder %s49_s12, %s49_s12 }
   0x5   :  { %p56_p3 = por %p55_p2, %p54_p1 }
   0x7   :  { %p57_p4 = pnand %p56_p3, %p50_p0 }
   0x9   :  { %60 = shalt.err (!%p57_p4)  }
   0xa   :  { %s71_s13 = smov [#allocation3]  }
   0xb   :  { %10 = dma.vmem_to_smem %s8_s11, 16, %s71_s13, [#allocation2] }
   0xc   :  { %65 = dma.done.wait [#allocation2], 16 }
   0xd   :  { %66 = vsyncadd [#allocation2], 4294967280 }
   0xe   :  { %12 = sfence }
   0xf   :  { %s67_s14 = smov 0  }
  0x10 LB: > { %s23_s15 = sld [smem:[#allocation3 + %s69_s14]]  ;;  %s26_s17 = scalar_lea.vmem %s98_s2, %s69_s14  ;;  %vm27_vm0 = vcmask 32768   ;;  %s69_s14 = sphi %s67_s14, %s21_s14  }
  0x11   : > { %s21_s14 = sadd.s32 1, %s69_s14  }
  0x12   : > { %p18_p5 = scmp.ge.s32.totalorder %s21_s14, 16  }
  0x14   :  { %20 = sbr.rel (!%p18_p5) target bundleno = 16 (0x10), region = 33 }
  0x16   : > { %s24_s20 = scalar_lea.vmem %s97_s1, %s23_s15 }
  0x17   : > { %v25_v0 = vld [vmem:[%s24_s20] sm:$0x1] }
  0x18   : > { %28 = vst.msk [vmem:[%s26_s17] sm:$0x1] %vm27_vm0, %v25_v0 }

</bundles_post_ra>
